<compile_context>
chip_gen: v7x
topology: tpu7x:2x2x1
jax: 0.10.0
libtpu: 0.0.40
codegen_flags: <defaults>
</compile_context>

<pallas_src>
import functools

import jax
import jax.numpy as jnp
from jax.experimental import pallas as pl
from jax.experimental.pallas import tpu as pltpu

ALL_FROM = None  # sentinel mirroring kurisunet's ALL_FROM ("take whole result")


# ------------------------------ fused kernel -------------------------------

def _fused_pipeline_kernel(x_ref, w1_ref, b1_ref, w2_ref, b2_ref, o_ref, *, W):
    """conv1(3x3)+bias -> ReLU -> conv2(3x3)+bias -> (+ residual input).

    Layouts (per grid step, Nb images per block):
      x_ref  : (Nb, Cin, M)    raw flattened NCHW images (M = H*W), f32
      w*_ref : (Cout, 9*Cin)   im2col weight slab, bf16 (K order: dh, dw, cin)
      b*_ref : (Cout, M)       bias pre-broadcast to lane-dense f32
      o_ref  : (Nb, Cout, M)   lane-dense f32 output
    """
    Nb, Cin, M = x_ref.shape
    P = W + 1  # zero halo covering the largest tap offset (+-(W+1))

    # Column index of every flattened pixel (for the w-direction borders).
    col = jax.lax.broadcasted_iota(jnp.int32, (1, M), 1) % W
    keep_dw0 = col < (W - 1)   # base for dw==0 taps: zero source column W-1
    keep_dw2 = col >= 1        # base for dw==2 taps: zero source column 0

    def padded(v):
        # (C, M) -> (C, M + 2P) with zero halos; the halo supplies the zeros
        # that SAME-conv reads above row 0 / below row H-1.
        z = jnp.zeros((v.shape[0], P), v.dtype)
        return jnp.concatenate([z, v, z], axis=1)

    def conv3x3(src, w_ref, b_ref):
        # src: (C, M) f32.  Build the (9*C, M) im2col tap stack, cast to bf16,
        # run ONE MXU GEMM with f32 accumulation, add the pre-broadcast bias.
        src_l = jnp.where(keep_dw0, src, 0.0)   # feeds the three dw==0 taps
        src_r = jnp.where(keep_dw2, src, 0.0)   # feeds the three dw==2 taps
        bases = (padded(src_l), padded(src), padded(src_r))
        taps = []
        for dh in range(3):
            for dw in range(3):
                lo = P + (dh - 1) * W + (dw - 1)       # static offset >= 0
                taps.append(bases[dw][:, lo:lo + M])   # (C, M) shifted tap
        t = jnp.concatenate(taps, axis=0).astype(jnp.bfloat16)   # (9C, M)
        acc = jnp.dot(w_ref[...], t, preferred_element_type=jnp.float32)
        return acc + b_ref[...]                        # f32 epilogue

    for nb in range(Nb):                               # static unroll
        x_img = x_ref[nb]                              # (Cin, M) f32
        # stage 1: conv1 + bias ; stage 2: ReLU (fused epilogue, stays in vregs)
        h = jnp.maximum(conv3x3(x_img, w1_ref, b1_ref), 0.0)
        # stage 3: conv2 + bias ; stage 4: residual add (fused epilogue)
        y = conv3x3(h, w2_ref, b2_ref) + x_img
        o_ref[nb] = y.astype(o_ref.dtype)


def fused_conv_relu_conv_add(x_nchw, w1_k, b1_m, w2_k, b2_m, *,
                             images_per_step=1):
    """Single pallas_call for conv->relu->conv->(+x) on an NCHW f32 tensor."""
    N, Cin, H, W = x_nchw.shape
    M = H * W
    Cmid = w1_k.shape[0]
    Cout = w2_k.shape[0]
    assert Cout == Cin, "residual add requires Cout == Cin"
    assert w1_k.shape[1] == 9 * Cin and w2_k.shape[1] == 9 * Cmid

    nb = max(1, min(images_per_step, N))
    assert N % nb == 0, "batch must divide images_per_step"
    grid = (N // nb,)

    x_flat = x_nchw.reshape(N, Cin, M)   # free reshape; no host-side padding

    kernel = functools.partial(_fused_pipeline_kernel, W=W)
    out = pl.pallas_call(
        kernel,
        out_shape=jax.ShapeDtypeStruct((N, Cout, M), jnp.float32),
        grid_spec=pltpu.PrefetchScalarGridSpec(
            num_scalar_prefetch=0,
            grid=grid,
            in_specs=[
                pl.BlockSpec((nb, Cin, M), lambda b: (b, 0, 0)),
                pl.BlockSpec((Cmid, 9 * Cin), lambda b: (0, 0)),
                pl.BlockSpec((Cmid, M), lambda b: (0, 0)),
                pl.BlockSpec((Cout, 9 * Cmid), lambda b: (0, 0)),
                pl.BlockSpec((Cout, M), lambda b: (0, 0)),
            ],
            out_specs=pl.BlockSpec((nb, Cout, M), lambda b: (b, 0, 0)),
        ),
        compiler_params=pltpu.CompilerParams(
            dimension_semantics=("parallel",)),
    )(x_flat, w1_k, b1_m, w2_k, b2_m)
    return out.reshape(N, Cout, H, W)


# ------------------------ PipelineModule equivalent ------------------------

class PipelinePallas:
    """Mirrors PipelineModule.forward: results dict keyed by layer index,
    each module reads its inputs via a `from` tuple of (index, key) pairs."""
    # TODO(synk): PipelineModule's dynamic registration / drop / resort
    # machinery is host-side configuration with no numeric forward-pass
    # equivalent; only the instantiated dataflow is lowered to Pallas.

    def __init__(self, modules):
        # modules: dict {index: (from_tuple, callable)}
        self._modules = modules

    def __call__(self, *x):
        def get_input(from_, results):
            return (results[k] if v is ALL_FROM else results[k][v]
                    for k, v in from_)

        results = {0: x[0] if len(x) == 1 else x}
        out = None
        for i, (from_, module) in self._modules.items():
            out = module(*get_input(from_, results))
            results[i] = out
        return out


def prepare_params(w1_oihw, b1, w2_oihw, b2, *, image_hw):
    """One-time (outside the hot path) re-layout of PyTorch OIHW conv params:
    weights as bf16 (Cout, 9*Cin) im2col slabs (K order dh, dw, cin), biases
    pre-broadcast to f32 (Cout, H*W) so the kernel's bias add is elementwise."""
    H, W = image_hw
    M = H * W

    def to_gemm(w):
        cout, cin = w.shape[0], w.shape[1]
        return (jnp.transpose(w, (0, 2, 3, 1))
                .reshape(cout, 9 * cin)
                .astype(jnp.bfloat16))

    def to_bias(b):
        return jnp.broadcast_to(b.astype(jnp.float32)[:, None],
                                (b.shape[0], M)) + 0.0   # materialize

    return to_gemm(w1_oihw), to_bias(b1), to_gemm(w2_oihw), to_bias(b2)


def build_pipeline(prepared):
    w1k, b1m, w2k, b2m = prepared
    # The 4-stage pipeline (conv -> ReLU -> conv -> residual add, residual
    # taken from results[0]) is registered as ONE fused submodule: the
    # results-dict dataflow is unchanged, but the stages execute inside a
    # single Pallas kernel with vreg-resident intermediates.
    fused = functools.partial(fused_conv_relu_conv_add,
                              w1_k=w1k, b1_m=b1m, w2_k=w2k, b2_m=b2m,
                              images_per_step=1)  # >=2 grid steps -> both v7x TCs
    modules = {1: (((0, ALL_FROM),), fused)}
    return PipelinePallas(modules)


@jax.jit
def pipeline_forward_nchw(x_nchw, w1_k, b1_m, w2_k, b2_m):
    return build_pipeline((w1_k, b1_m, w2_k, b2_m))(x_nchw)


# ------------------------------- references --------------------------------

def _q(v):
    """bf16 quantize-dequantize, mirroring the kernel's MXU operand cast."""
    return v.astype(jnp.bfloat16).astype(jnp.float32)


def reference_forward_nchw(x, w1, b1, w2, b2, *, quantize_ops=False):
    dn = ("NCHW", "OIHW", "NCHW")
    q = _q if quantize_ops else (lambda v: v)
    y = jax.lax.conv_general_dilated(q(x), q(w1), (1, 1), "SAME",
                                     dimension_numbers=dn,
                                     preferred_element_type=jnp.float32)
    y = y + b1[None, :, None, None]
    y = jnp.maximum(y, 0.0)
    y = jax.lax.conv_general_dilated(q(y), q(w2), (1, 1), "SAME",
                                     dimension_numbers=dn,
                                     preferred_element_type=jnp.float32)
    y = y + b2[None, :, None, None]
    return y + x


if __name__ == "__main__":
    key = jax.random.PRNGKey(0)
    kx, k1, kb1, k2, kb2 = jax.random.split(key, 5)

    # small shapes: batch=2, channels=4, spatial=16x16 (NCHW like PyTorch)
    x = jax.random.normal(kx, (2, 4, 16, 16), dtype=jnp.float32)

    # deterministic parameter init (PyTorch Conv2d shapes: OIHW + bias)
    w1 = jax.random.normal(k1, (8, 4, 3, 3), dtype=jnp.float32) / jnp.sqrt(4 * 9)
    b1 = jax.random.normal(kb1, (8,), dtype=jnp.float32) * 0.1
    w2 = jax.random.normal(k2, (4, 8, 3, 3), dtype=jnp.float32) / jnp.sqrt(8 * 9)
    b2 = jax.random.normal(kb2, (4,), dtype=jnp.float32) * 0.1

    prepared = prepare_params(w1, b1, w2, b2, image_hw=(16, 16))  # done once
    out = pipeline_forward_nchw(x, *prepared)
    jax.block_until_ready(out)

    # 1) tight check vs a reference with the SAME bf16 operand quantization
    #    (isolates real kernel bugs from the intentional MXU operand cast);
    # 2) loose sanity check vs the pure-f32 reference (bf16 operands bound).
    ref_q = reference_forward_nchw(x, w1, b1, w2, b2, quantize_ops=True)
    ref_f32 = reference_forward_nchw(x, w1, b1, w2, b2, quantize_ops=False)
    assert out.shape == ref_f32.shape == (2, 4, 16, 16)
    assert jnp.max(jnp.abs(out - ref_q)) < 1e-3
    assert jnp.max(jnp.abs(out - ref_f32)) < 5e-2

    print("KERNEL_OK")
</pallas_src>

<mosaic_0001>
module attributes {stable_mosaic.version = 11 : i64} {
  func.func @_fused_pipeline_kernel(%arg0: i32, %arg1: memref<1x4x256xf32, #tpu.memory_space<vmem>>, %arg2: memref<8x36xbf16, #tpu.memory_space<vmem>>, %arg3: memref<8x256xf32, #tpu.memory_space<vmem>>, %arg4: memref<4x72xbf16, #tpu.memory_space<vmem>>, %arg5: memref<4x256xf32, #tpu.memory_space<vmem>>, %arg6: memref<1x4x256xf32, #tpu.memory_space<vmem>>) attributes {dimension_semantics = [#tpu.dimension_semantics<parallel>], iteration_bounds = array<i64: 2>, scalar_prefetch = 0 : i64, scratch_operands = 0 : i64, tpu.core_type = #tpu.core_type<tc>, window_params = [{transform_indices = @transform_0, window_bounds = array<i64: 1, 4, 256>}, {pipeline_mode = #tpu.pipeline_mode<synchronous>, transform_indices = @transform_1, window_bounds = array<i64: 8, 36>}, {pipeline_mode = #tpu.pipeline_mode<synchronous>, transform_indices = @transform_2, window_bounds = array<i64: 8, 256>}, {pipeline_mode = #tpu.pipeline_mode<synchronous>, transform_indices = @transform_3, window_bounds = array<i64: 4, 72>}, {pipeline_mode = #tpu.pipeline_mode<synchronous>, transform_indices = @transform_4, window_bounds = array<i64: 4, 256>}, {transform_indices = @transform_5, window_bounds = array<i64: 1, 4, 256>}]} {
    %0 = tpu.iota {dimensions = array<i32: 1>} : vector<1x256xi32>
    %c16_i32 = arith.constant 16 : i32
    %c0_i32 = arith.constant 0 : i32
    %1 = arith.cmpi eq, %c16_i32, %c0_i32 : i32
    %c1_i32 = arith.constant 1 : i32
    %2 = arith.select %1, %c1_i32, %c16_i32 : i32
    %3 = vector.broadcast %2 : i32 to vector<1x256xi32>
    %4 = arith.remsi %0, %3 : vector<1x256xi32>
    %c0_i32_0 = arith.constant 0 : i32
    %5 = vector.broadcast %c0_i32_0 : i32 to vector<1x256xi32>
    %6 = arith.cmpi ne, %4, %5 : vector<1x256xi32>
    %c0_i32_1 = arith.constant 0 : i32
    %7 = vector.broadcast %c0_i32_1 : i32 to vector<1x256xi32>
    %8 = arith.cmpi slt, %4, %7 : vector<1x256xi32>
    %c0_i32_2 = arith.constant 0 : i32
    %9 = arith.cmpi slt, %2, %c0_i32_2 : i32
    %10 = vector.broadcast %9 : i1 to vector<1x256xi1>
    %11 = vector.broadcast %10 : vector<1x256xi1> to vector<1x256xi1>
    %12 = arith.xori %8, %11 : vector<1x256xi1>
    %13 = arith.andi %12, %6 : vector<1x256xi1>
    %14 = vector.broadcast %2 : i32 to vector<1x256xi32>
    %15 = arith.addi %4, %14 : vector<1x256xi32>
    %16 = arith.select %13, %15, %4 : vector<1x256xi1>, vector<1x256xi32>
    %c15_i32 = arith.constant 15 : i32
    %17 = vector.broadcast %c15_i32 : i32 to vector<1x256xi32>
    %18 = arith.cmpi slt, %16, %17 : vector<1x256xi32>
    %c1_i32_3 = arith.constant 1 : i32
    %19 = vector.broadcast %c1_i32_3 : i32 to vector<1x256xi32>
    %20 = arith.cmpi sge, %16, %19 : vector<1x256xi32>
    %c0 = arith.constant 0 : index
    %c0_4 = arith.constant 0 : index
    %c0_5 = arith.constant 0 : index
    %21 = vector.load %arg1[%c0, %c0_4, %c0_5] : memref<1x4x256xf32, #tpu.memory_space<vmem>>, vector<1x4x256xf32>
    %22 = vector.shape_cast %21 : vector<1x4x256xf32> to vector<4x256xf32>
    %cst = arith.constant 0.000000e+00 : f32
    %23 = vector.shape_cast %18 : vector<1x256xi1> to vector<1x256xi1>
    %24 = vector.broadcast %23 : vector<1x256xi1> to vector<4x256xi1>
    %25 = vector.broadcast %cst : f32 to vector<4x256xf32>
    %26 = arith.select %24, %22, %25 : vector<4x256xi1>, vector<4x256xf32>
    %cst_6 = arith.constant 0.000000e+00 : f32
    %27 = vector.shape_cast %20 : vector<1x256xi1> to vector<1x256xi1>
    %28 = vector.broadcast %27 : vector<1x256xi1> to vector<4x256xi1>
    %29 = vector.broadcast %cst_6 : f32 to vector<4x256xf32>
    %30 = arith.select %28, %22, %29 : vector<4x256xi1>, vector<4x256xf32>
    %cst_7 = arith.constant 0.000000e+00 : f32
    %31 = vector.broadcast %cst_7 : f32 to vector<4x17xf32>
    %32 = tpu.concatenate %31, %26, %31 in 1 : vector<4x17xf32>, vector<4x256xf32>, vector<4x17xf32> -> vector<4x290xf32>
    %cst_8 = arith.constant 0.000000e+00 : f32
    %33 = vector.broadcast %cst_8 : f32 to vector<4x17xf32>
    %34 = tpu.concatenate %33, %22, %33 in 1 : vector<4x17xf32>, vector<4x256xf32>, vector<4x17xf32> -> vector<4x290xf32>
    %cst_9 = arith.constant 0.000000e+00 : f32
    %35 = vector.broadcast %cst_9 : f32 to vector<4x17xf32>
    %36 = tpu.concatenate %35, %30, %35 in 1 : vector<4x17xf32>, vector<4x256xf32>, vector<4x17xf32> -> vector<4x290xf32>
    %37 = vector.extract_strided_slice %32 {offsets = [0, 0], sizes = [4, 256], strides = [1, 1]} : vector<4x290xf32> to vector<4x256xf32>
    %38 = vector.extract_strided_slice %34 {offsets = [0, 1], sizes = [4, 256], strides = [1, 1]} : vector<4x290xf32> to vector<4x256xf32>
    %39 = vector.extract_strided_slice %36 {offsets = [0, 2], sizes = [4, 256], strides = [1, 1]} : vector<4x290xf32> to vector<4x256xf32>
    %40 = vector.extract_strided_slice %32 {offsets = [0, 16], sizes = [4, 256], strides = [1, 1]} : vector<4x290xf32> to vector<4x256xf32>
    %41 = vector.extract_strided_slice %34 {offsets = [0, 17], sizes = [4, 256], strides = [1, 1]} : vector<4x290xf32> to vector<4x256xf32>
    %42 = vector.extract_strided_slice %36 {offsets = [0, 18], sizes = [4, 256], strides = [1, 1]} : vector<4x290xf32> to vector<4x256xf32>
    %43 = vector.extract_strided_slice %32 {offsets = [0, 32], sizes = [4, 256], strides = [1, 1]} : vector<4x290xf32> to vector<4x256xf32>
    %44 = vector.extract_strided_slice %34 {offsets = [0, 33], sizes = [4, 256], strides = [1, 1]} : vector<4x290xf32> to vector<4x256xf32>
    %45 = vector.extract_strided_slice %36 {offsets = [0, 34], sizes = [4, 256], strides = [1, 1]} : vector<4x290xf32> to vector<4x256xf32>
    %46 = tpu.concatenate %37, %38, %39, %40, %41, %42, %43, %44, %45 in 0 : vector<4x256xf32>, vector<4x256xf32>, vector<4x256xf32>, vector<4x256xf32>, vector<4x256xf32>, vector<4x256xf32>, vector<4x256xf32>, vector<4x256xf32>, vector<4x256xf32> -> vector<36x256xf32>
    %47 = arith.truncf %46 : vector<36x256xf32> to vector<36x256xbf16>
    %c0_10 = arith.constant 0 : index
    %c0_11 = arith.constant 0 : index
    %48 = vector.load %arg2[%c0_10, %c0_11] : memref<8x36xbf16, #tpu.memory_space<vmem>>, vector<8x36xbf16>
    %cst_12 = arith.constant dense<0.000000e+00> : vector<8x256xf32>
    %49 = tpu.matmul %48, %47, %cst_12 {dimension_numbers = #tpu.dot_dimension_numbers<[1], [0], [0], [1], [0, 0, 1, 1], [], []>} : vector<8x36xbf16>, vector<36x256xbf16>, vector<8x256xf32> -> vector<8x256xf32>
    %c0_13 = arith.constant 0 : index
    %c0_14 = arith.constant 0 : index
    %50 = vector.load %arg3[%c0_13, %c0_14] : memref<8x256xf32, #tpu.memory_space<vmem>>, vector<8x256xf32>
    %51 = arith.addf %49, %50 : vector<8x256xf32>
    %cst_15 = arith.constant 0.000000e+00 : f32
    %52 = vector.broadcast %cst_15 : f32 to vector<8x256xf32>
    %53 = arith.maximumf %51, %52 : vector<8x256xf32>
    %cst_16 = arith.constant 0.000000e+00 : f32
    %54 = vector.shape_cast %18 : vector<1x256xi1> to vector<1x256xi1>
    %55 = vector.broadcast %54 : vector<1x256xi1> to vector<8x256xi1>
    %56 = vector.broadcast %cst_16 : f32 to vector<8x256xf32>
    %57 = arith.select %55, %53, %56 : vector<8x256xi1>, vector<8x256xf32>
    %cst_17 = arith.constant 0.000000e+00 : f32
    %58 = vector.shape_cast %20 : vector<1x256xi1> to vector<1x256xi1>
    %59 = vector.broadcast %58 : vector<1x256xi1> to vector<8x256xi1>
    %60 = vector.broadcast %cst_17 : f32 to vector<8x256xf32>
    %61 = arith.select %59, %53, %60 : vector<8x256xi1>, vector<8x256xf32>
    %cst_18 = arith.constant 0.000000e+00 : f32
    %62 = vector.broadcast %cst_18 : f32 to vector<8x17xf32>
    %63 = tpu.concatenate %62, %57, %62 in 1 : vector<8x17xf32>, vector<8x256xf32>, vector<8x17xf32> -> vector<8x290xf32>
    %cst_19 = arith.constant 0.000000e+00 : f32
    %64 = vector.broadcast %cst_19 : f32 to vector<8x17xf32>
    %65 = tpu.concatenate %64, %53, %64 in 1 : vector<8x17xf32>, vector<8x256xf32>, vector<8x17xf32> -> vector<8x290xf32>
    %cst_20 = arith.constant 0.000000e+00 : f32
    %66 = vector.broadcast %cst_20 : f32 to vector<8x17xf32>
    %67 = tpu.concatenate %66, %61, %66 in 1 : vector<8x17xf32>, vector<8x256xf32>, vector<8x17xf32> -> vector<8x290xf32>
    %68 = vector.extract_strided_slice %63 {offsets = [0, 0], sizes = [8, 256], strides = [1, 1]} : vector<8x290xf32> to vector<8x256xf32>
    %69 = vector.extract_strided_slice %65 {offsets = [0, 1], sizes = [8, 256], strides = [1, 1]} : vector<8x290xf32> to vector<8x256xf32>
    %70 = vector.extract_strided_slice %67 {offsets = [0, 2], sizes = [8, 256], strides = [1, 1]} : vector<8x290xf32> to vector<8x256xf32>
    %71 = vector.extract_strided_slice %63 {offsets = [0, 16], sizes = [8, 256], strides = [1, 1]} : vector<8x290xf32> to vector<8x256xf32>
    %72 = vector.extract_strided_slice %65 {offsets = [0, 17], sizes = [8, 256], strides = [1, 1]} : vector<8x290xf32> to vector<8x256xf32>
    %73 = vector.extract_strided_slice %67 {offsets = [0, 18], sizes = [8, 256], strides = [1, 1]} : vector<8x290xf32> to vector<8x256xf32>
    %74 = vector.extract_strided_slice %63 {offsets = [0, 32], sizes = [8, 256], strides = [1, 1]} : vector<8x290xf32> to vector<8x256xf32>
    %75 = vector.extract_strided_slice %65 {offsets = [0, 33], sizes = [8, 256], strides = [1, 1]} : vector<8x290xf32> to vector<8x256xf32>
    %76 = vector.extract_strided_slice %67 {offsets = [0, 34], sizes = [8, 256], strides = [1, 1]} : vector<8x290xf32> to vector<8x256xf32>
    %77 = tpu.concatenate %68, %69, %70, %71, %72, %73, %74, %75, %76 in 0 : vector<8x256xf32>, vector<8x256xf32>, vector<8x256xf32>, vector<8x256xf32>, vector<8x256xf32>, vector<8x256xf32>, vector<8x256xf32>, vector<8x256xf32>, vector<8x256xf32> -> vector<72x256xf32>
    %78 = arith.truncf %77 : vector<72x256xf32> to vector<72x256xbf16>
    %c0_21 = arith.constant 0 : index
    %c0_22 = arith.constant 0 : index
    %79 = vector.load %arg4[%c0_21, %c0_22] : memref<4x72xbf16, #tpu.memory_space<vmem>>, vector<4x72xbf16>
    %cst_23 = arith.constant dense<0.000000e+00> : vector<4x256xf32>
    %80 = tpu.matmul %79, %78, %cst_23 {dimension_numbers = #tpu.dot_dimension_numbers<[1], [0], [0], [1], [0, 0, 1, 1], [], []>} : vector<4x72xbf16>, vector<72x256xbf16>, vector<4x256xf32> -> vector<4x256xf32>
    %c0_24 = arith.constant 0 : index
    %c0_25 = arith.constant 0 : index
    %81 = vector.load %arg5[%c0_24, %c0_25] : memref<4x256xf32, #tpu.memory_space<vmem>>, vector<4x256xf32>
    %82 = arith.addf %80, %81 : vector<4x256xf32>
    %83 = arith.addf %82, %22 : vector<4x256xf32>
    %c0_26 = arith.constant 0 : index
    %c0_27 = arith.constant 0 : index
    %c0_28 = arith.constant 0 : index
    %84 = vector.load %arg6[%c0_26, %c0_27, %c0_28] : memref<1x4x256xf32, #tpu.memory_space<vmem>>, vector<1x4x256xf32>
    %85 = vector.shape_cast %84 : vector<1x4x256xf32> to vector<4x256xf32>
    %86 = vector.shape_cast %83 : vector<4x256xf32> to vector<1x4x256xf32>
    tpu.vector_store %arg6[%c0_26, %c0_27, %c0_28], %86 {strides = array<i32>} : memref<1x4x256xf32, #tpu.memory_space<vmem>>, vector<1x4x256xf32>,
    return
  }
  func.func @transform_0(%arg0: i32) -> (i32, i32, i32) {
    %c0_i32 = arith.constant 0 : i32
    %c0_i32_0 = arith.constant 0 : i32
    %c0_i32_1 = arith.constant 0 : i32
    return %arg0, %c0_i32, %c0_i32_0 : i32, i32, i32
  }
  func.func @transform_1(%arg0: i32) -> (i32, i32) {
    %c0_i32 = arith.constant 0 : i32
    %c0_i32_0 = arith.constant 0 : i32
    %c0_i32_1 = arith.constant 0 : i32
    return %c0_i32, %c0_i32_0 : i32, i32
  }
  func.func @transform_2(%arg0: i32) -> (i32, i32) {
    %c0_i32 = arith.constant 0 : i32
    %c0_i32_0 = arith.constant 0 : i32
    %c0_i32_1 = arith.constant 0 : i32
    return %c0_i32, %c0_i32_0 : i32, i32
  }
  func.func @transform_3(%arg0: i32) -> (i32, i32) {
    %c0_i32 = arith.constant 0 : i32
    %c0_i32_0 = arith.constant 0 : i32
    %c0_i32_1 = arith.constant 0 : i32
    return %c0_i32, %c0_i32_0 : i32, i32
  }
  func.func @transform_4(%arg0: i32) -> (i32, i32) {
    %c0_i32 = arith.constant 0 : i32
    %c0_i32_0 = arith.constant 0 : i32
    %c0_i32_1 = arith.constant 0 : i32
    return %c0_i32, %c0_i32_0 : i32, i32
  }
  func.func @transform_5(%arg0: i32) -> (i32, i32, i32) {
    %c0_i32 = arith.constant 0 : i32
    %c0_i32_0 = arith.constant 0 : i32
    %c0_i32_1 = arith.constant 0 : i32
    return %arg0, %c0_i32, %c0_i32_0 : i32, i32, i32
  }
}

</mosaic_0001>

<bundles_post_ra>
// kernel: pipeline_forward_nchw.1
= control target key start
LH: loop header
LB: loop body
LE: loop exit
PB: predicated region body
PF: predicated region fallthrough
CT: control target
= control target key end

     0   :  { %s934_s18 = smov 0   ;;  %s1123_s0 = inlined_call_operand.vmem [shape: f32[2,4,256], index: 0, kind: input, shape index: {}]   ;;  %s1124_s1 = inlined_call_operand.vmem [shape: bf16[8,36], index: 1, kind: input, shape index: {}]   ;;  %s1125_s2 = inlined_call_operand.vmem [shape: f32[8,256], index: 2, kind: input, shape index: {}]   ;;  %s1126_s3 = inlined_call_operand.vmem [shape: bf16[4,72], index: 3, kind: input, shape index: {}]   ;;  %s1127_s4 = inlined_call_operand.vmem [shape: f32[4,256], index: 4, kind: input, shape index: {}]   ;;  %s1128_s5 = inlined_call_operand.vmem [shape: f32[2,4,256], index: 5, kind: output, shape index: {}]  }
   0x1 LB: > { %s733_s19 = sadd.s32 4294967295, %s891_s18   ;;  %p737_p0 = scmp.ge.s32.totalorder %s891_s18, 1  ;;  %s891_s18 = sphi %s934_s18, %s15_s18  }
   0x2   : > { %p187_p1 = scmp.lt.s32.totalorder %s891_s18, 3 }
   0x4   : > { %p188_p2 = pnand %p737_p0, %p187_p1 }
   0x5   : > { %p215_p3 = scmp.lt.s32.totalorder (!%p188_p2), %s733_s19, 1  ;;  %v226_v0 = vlaneseq (!%p188_p2)  ;;  %s893_s24 = smov (!%p188_p2), 17   ;;  %vm279_vm4 = vcmask (!%p188_p2), 138240   ;;  %v901_v51 = vmov (!%p188_p2), 0   ;;  %vm317_vm5 = vcmask (!%p188_p2), 1039360  }
   0x6   : > { %191 = sbr.rel (%p188_p2) target bundleno = 1005 (0x3ed), region = 40  ;;  %s894_s25 = smov (!%p188_p2), 126   ;;  %470 = vmatprep.mubr.bf16.mxu0 (!%p188_p2), %v901_v51  ;;  %662 = vmatprep.mubr.bf16.mxu1 (!%p188_p2), %v901_v51  ;;  %vm330_vm6 = vcmask (!%p188_p2), 1031168   ;;  %vm346_vm7 = vcmask (!%p188_p2), 916480   ;;  %vm409_vm8 = vcmask (!%p188_p2), 1043456   ;;  %vm393_vm9 = vcmask (!%p188_p2), 777216  }
   0x7   : > { %v227_v1 = vand.u32 (!%p188_p2), 127, %v226_v0  ;;  %s895_s26 = smov (!%p188_p2), 127   ;;  %s896_s27 = smov (!%p188_p2), 111   ;;  %vm357_vm10 = vcmask (!%p188_p2), 908288   ;;  %vm371_vm11 = vcmask (!%p188_p2), 900096   ;;  %vm382_vm12 = vcmask (!%p188_p2), 785408  }
   0x8   : > { %s897_s28 = smov (!%p188_p2), 96   ;;  %s898_s29 = smov (!%p188_p2), 112   ;;  %vm404_vm13 = vcmask (!%p188_p2), 769024   ;;  %vm431_vm14 = vcmask (!%p188_p2), 1041408   ;;  %vm427_vm15 = vcmask (!%p188_p2), 293888  }
   0x9   : > { %v228_v2 = vadd.s32 (!%p188_p2), 128, %v227_v1  ;;  %v233_v3 = vand.u32 (!%p188_p2), 15, %v227_v1  ;;  %s899_s30 = smov (!%p188_p2), 95   ;;  %s900_s6 = smov (!%p188_p2), 110  }
   0xa   : > { %s902_s7 = smov (!%p188_p2), 94  }
   0xb   : > { %v240_v4 = vand.u32 (!%p188_p2), 15, %v228_v2  ;;  %vm950_vm0 = vcmp.lt.s32.totalorder (!%p188_p2), %v233_v3, 15  ;;  %vm956_vm1 = vcmp.ge.s32.totalorder (!%p188_p2), %v233_v3, 1 }
   0xd   : > { %s1138_s19 = smov (!%p215_p3, %s733_s19), 1  ;;  %vm970_vm2 = vcmp.lt.s32.totalorder %v240_v4, 15  ;;  %vm974_vm3 = vcmp.ge.s32.totalorder %v240_v4, 1 }
   0xe   : > { %s752_s20 = sshll.u32 %s1138_s19, 3 }
   0xf   : > { %s219_s23 = scalar_lea.vmem %s1123_s0, %s752_s20 }
  0x10   : > { %v954_v6 = vld [vmem:[%s219_s23] sm:$0xff]  ;;  %s224_s23 = scalar_lea.vmem %s1128_s5, %s752_s20 }
  0x11   : > { %v962_v8 = vcombine.high %v954_v6, %v954_v6  ;;  %v265_v9 = vsel %vm950_vm0, %v954_v6, 0.0  ;;  %v271_v10 = vsel %vm956_vm1, %v954_v6, 0.0 }
  0x13   : > { %v266_v13 = vsel %vm970_vm2, %v962_v8, 0.0  ;;  %v272_v14 = vsel %vm974_vm3, %v962_v8, 0.0  ;;  %v778_v17 = vpack.i.bf16 %v962_v8, %v954_v6 }
  0x14   : > { %v773_v15 = vpack.i.bf16 %v266_v13, %v265_v9  ;;  %v783_v16 = vpack.i.bf16 %v272_v14, %v271_v10 }
  0x16   : > { %774 = vrot.lane.b32.xlu0 %v773_v15, %s893_s24  ;;  %784 = vrot.lane.b32.xlu1 %v783_v16, %s893_s24 }
  0x1a   : > { %779 = vrot.lane.b32.xlu0 %v778_v17, %s893_s24 }
  0x88   : > { %v775_v18 = vpop.permute.xlu0 %774  ;;  %v785_v19 = vpop.permute.xlu1 %784 }
  0x89   : > { %v786_v20 = vunpack.i.l.bf16 %v785_v19  ;;  %v777_v22 = vunpack.i.h.bf16 %v775_v18  ;;  %v776_v24 = vunpack.i.l.bf16 %v775_v18  ;;  %v787_v25 = vunpack.i.h.bf16 %v785_v19 }
  0x8b   : > { %v304_v21 = vsel %vm279_vm4, 0.0, %v786_v20  ;;  %v285_v33 = vsel %vm279_vm4, %v777_v22, 0.0  ;;  %v305_v34 = vsel %vm279_vm4, %v787_v25, 0.0  ;;  %v301_v35 = vsel %vm279_vm4, %v786_v20, %v787_v25 }
  0x8c   : > { %v780_v23 = vpop.permute.xlu0 %779  ;;  %324 = vrot.lane.b32.xlu1 %v304_v21, %s894_s25  ;;  %v998_v36 = vsel %vm279_vm4, %v776_v24, %v777_v22  ;;  %v793_v38 = vpack.i.bf16 %v305_v34, %v301_v35  ;;  %v284_v41 = vsel %vm279_vm4, 0.0, %v776_v24  ;;  %v339_v42 = vrot.slane %v285_v33, 4 }
  0x8d   : > { %v782_v26 = vunpack.i.h.bf16 %v780_v23  ;;  %v781_v27 = vunpack.i.l.bf16 %v780_v23  ;;  %v798_v39 = vpack.i.bf16 %v285_v33, %v998_v36  ;;  %v337_v43 = vrot.slane %v284_v41, 4 }
  0x8e   : > { %v338_v45 = vrot.slane %v998_v36, 4  ;;  %v362_v47 = vrot.slane %v304_v21, 4  ;;  %v363_v48 = vrot.slane %v301_v35, 4  ;;  %v364_v49 = vrot.slane %v305_v34, 4 }
  0x8f   : > { %v294_v28 = vsel %vm279_vm4, %v782_v26, 0.0  ;;  %v293_v29 = vsel %vm279_vm4, 0.0, %v781_v27  ;;  %v290_v30 = vsel %vm279_vm4, %v781_v27, %v782_v26  ;;  %v823_v52 = vpack.i.bf16 %v301_v35, %v304_v21 }
  0x90   : > { %v308_v31 = vrot.slane %v293_v29, 4  ;;  %v788_v32 = vpack.i.bf16 %v294_v28, %v290_v30  ;;  %v310_v37 = vrot.slane %v294_v28, 4  ;;  %v309_v40 = vrot.slane %v290_v30, 4 }
  0x91   : > { %v813_v46 = vpack.i.bf16 %v339_v42, %v338_v45  ;;  %v818_v50 = vpack.i.bf16 %v364_v49, %v363_v48 }
  0x92   : > { %311 = vrot.lane.b32.xlu0 %v308_v31, %s895_s26  ;;  %789 = vrot.lane.b32.xlu1 %v788_v32, %s896_s27  ;;  %v803_v44 = vpack.i.bf16 %v310_v37, %v309_v40 }
  0x96   : > { %794 = vrot.lane.b32.xlu0 %v793_v38, %s894_s25  ;;  %799 = vrot.lane.b32.xlu1 %v798_v39, %s897_s28 }
  0x9a   : > { %340 = vrot.lane.b32.xlu0 %v337_v43, %s898_s29  ;;  %804 = vrot.lane.b32.xlu1 %v803_v44, %s895_s26 }
  0x9e   : > { %809 = vrot.lane.b32.xlu0 %v803_v44, %s899_s30  ;;  %814 = vrot.lane.b32.xlu1 %v813_v46, %s898_s29 }
  0xa2   : > { %365 = vrot.lane.b32.xlu0 %v362_v47, %s900_s6  ;;  %351 = vrot.lane.b32.xlu1 %v293_v29, %s896_s27 }
  0xa6   : > { %819 = vrot.lane.b32.xlu0 %v818_v50, %s900_s6  ;;  %376 = vrot.lane.b32.xlu1 %v284_v41, %s897_s28 }
  0xaa   : > { %387 = vrot.lane.b32.xlu0 %v308_v31, %s899_s30  ;;  %824 = vrot.lane.b32.xlu1 %v823_v52, %s902_s7 }
  0xae   : > { %402 = vrot.lane.b32.xlu0 %v305_v34, %s902_s7 }
  0xfe   : > { %v325_v53 = vpop.permute.xlu1 %324 }
 0x104   : > { %v312_v54 = vpop.permute.xlu0 %311  ;;  %v790_v55 = vpop.permute.xlu1 %789 }
 0x105   : > { %v792_v26 = vunpack.i.h.bf16 %v790_v55  ;;  %v791_v27 = vunpack.i.l.bf16 %v790_v55 }
 0x107   : > { %v359_v37 = vsel %vm357_vm10, %v791_v27, %v792_v26 }
 0x108   : > { %v795_v56 = vpop.permute.xlu0 %794  ;;  %v800_v57 = vpop.permute.xlu1 %799 }
 0x109   : > { %v797_v62 = vunpack.i.h.bf16 %v795_v56  ;;  %v796_v63 = vunpack.i.l.bf16 %v795_v56  ;;  %v802_v28 = vunpack.i.h.bf16 %v800_v57  ;;  %v801_v29 = vunpack.i.l.bf16 %v800_v57 }
 0x10b   : > { %v332_v10 = vsel %vm330_vm6, %v796_v63, %v797_v62  ;;  %v331_v14 = vsel %vm330_vm6, %v325_v53, %v796_v63  ;;  %v384_v38 = vsel %vm382_vm12, %v801_v29, %v802_v28 }
 0x10c   : > { %v341_v58 = vpop.permute.xlu0 %340  ;;  %v805_v59 = vpop.permute.xlu1 %804 }
 0x10d   : > { %v807_v60 = vunpack.i.h.bf16 %v805_v59  ;;  %v806_v61 = vunpack.i.l.bf16 %v805_v59  ;;  %v425_v59 = vld [vmem:[%s1125_s2] sm:$0xff] }
 0x10f   : > { %v319_v4 = vsel %vm317_vm5, %v806_v61, %v807_v60  ;;  %v318_v9 = vsel %vm317_vm5, %v312_v54, %v806_v61  ;;  %v426_v60 = vld [vmem:[%s1125_s2 + $0x8] sm:$0xff] }
 0x110   : > { %v810_v0 = vpop.permute.xlu0 %809  ;;  %v815_v1 = vpop.permute.xlu1 %814  ;;  %v411_v18 = vsel %vm409_vm8, %v998_v36, %v319_v4  ;;  %v410_v20 = vsel %vm409_vm8, %v284_v41, %v318_v9 }
 0x111   : > { %v817_v2 = vunpack.i.h.bf16 %v815_v1  ;;  %v816_v3 = vunpack.i.l.bf16 %v815_v1  ;;  %v812_v22 = vunpack.i.h.bf16 %v810_v0  ;;  %v811_v23 = vunpack.i.l.bf16 %v810_v0 }
 0x113   : > { %v348_v13 = vsel %vm346_vm7, %v816_v3, %v817_v2  ;;  %v347_v15 = vsel %vm346_vm7, %v341_v58, %v816_v3  ;;  %v395_v34 = vsel %vm393_vm9, %v811_v23, %v812_v22  ;;  %v424_v58 = vld [vmem:[%s1124_s1] sm:$0xf] }
 0x114   : > { %v366_v16 = vpop.permute.xlu0 %365  ;;  %v352_v17 = vpop.permute.xlu1 %351  ;;  %v413_v19 = vsel %vm409_vm8, %v332_v10, %v348_v13  ;;  %v412_v21 = vsel %vm409_vm8, %v331_v14, %v347_v15  ;;  %v417_v44 = vsel %vm409_vm8, %v384_v38, %v395_v34 }
 0x115   : > { %v419_v24 = vpack.c.bf16 %v413_v19, %v411_v18  ;;  %v418_v25 = vpack.c.bf16 %v412_v21, %v410_v20  ;;  %v358_v39 = vsel %vm357_vm10, %v352_v17, %v791_v27 }
 0x117   : > { %438 = vmatprep.subr.bf16.mxu0 %v419_v24 }
 0x118   : > { %v820_v30 = vpop.permute.xlu0 %819  ;;  %v377_v31 = vpop.permute.xlu1 %376  ;;  %439 = vmatpush1.bf16.msra.mxu0 %v418_v25 }
 0x119   : > { %v822_v32 = vunpack.i.h.bf16 %v820_v30  ;;  %v821_v33 = vunpack.i.l.bf16 %v820_v30  ;;  %v383_v40 = vsel %vm382_vm12, %v377_v31, %v801_v29 }
 0x11b   : > { %v372_v35 = vsel %vm371_vm11, %v366_v16, %v821_v33  ;;  %v373_v36 = vsel %vm371_vm11, %v821_v33, %v822_v32 }
 0x11c   : > { %v388_v41 = vpop.permute.xlu0 %387  ;;  %v825_v42 = vpop.permute.xlu1 %824  ;;  %v415_v43 = vsel %vm409_vm8, %v359_v37, %v373_v36  ;;  %v414_v50 = vsel %vm409_vm8, %v358_v39, %v372_v35 }
 0x11d   : > { %v394_v45 = vsel %vm393_vm9, %v388_v41, %v811_v23  ;;  %v827_v46 = vunpack.i.h.bf16 %v825_v42  ;;  %v826_v47 = vunpack.i.l.bf16 %v825_v42  ;;  %v421_v48 = vpack.c.bf16 %v417_v44, %v415_v43 }
 0x11e   : > { %v416_v49 = vsel %vm409_vm8, %v383_v40, %v394_v45 }
 0x11f   : > { %440 = vmatprep.subr.bf16.mxu0 %v421_v48  ;;  %v420_v51 = vpack.c.bf16 %v416_v49, %v414_v50  ;;  %v405_v52 = vsel %vm404_vm13, %v826_v47, %v827_v46 }
 0x120   : > { %v403_v53 = vpop.permute.xlu0 %402  ;;  %v422_v54 = vpack.c.bf16 %v405_v52, %v405_v52 }
 0x121   : > { %v406_v55 = vsel %vm404_vm13, %v827_v46, %v403_v53  ;;  %441 = vmatpush1.bf16.msra.mxu0 %v420_v51 }
 0x122   : > { %v423_v56 = vpack.c.bf16 %v406_v55, %v406_v55  ;;  %v433_v57 = vsel %vm431_vm14, %v422_v54, 0 }
 0x124   : > { %742 = vmatprep.subr.msk.bf16.mxu0 %vm431_vm14, %v423_v56 }
 0x125   : > { %443 = vmatpush1.bf16.msra.mxu0 %v433_v57 }
 0x128   : > { %743 = vmatmul.mubr.msk.bf16.vlgmr.msra.gmra.mrb[0].mxu0 %vm427_vm15, %v424_v58 }
 0x1fb   : > { %v472_v61 = vpop.f32.mrb[0].mxu0 }
 0x1fc   : > { %v473_v62 = vadd.f32 %v472_v61, %v425_v59  ;;  %v474_v63 = vpop.f32.mrb[1].mxu0 }
 0x1fd   : > { %v475_v0 = vadd.f32 %v474_v63, %v426_v60  ;;  %v476_v1 = vpop.f32.mrb[2].mxu0 }
 0x1fe   : > { %v479_v2 = vmax.f32 %v473_v62, 0.0  ;;  %v477_v3 = vpop.f32.mrb[3].mxu0 }
 0x1ff   : > { %v480_v4 = vmax.f32 %v475_v0, 0.0 }
 0x200   : > { %v481_v9 = vsel %vm950_vm0, %v479_v2, 0.0  ;;  %v483_v10 = vsel %vm956_vm1, %v479_v2, 0.0  ;;  %vm744_vm0 = vmneg %vm279_vm4  ;;  %vm903_vm1 = vmmov 1  }
 0x201   : > { %v828_v13 = vpack.i.bf16 %v480_v4, %v479_v2  ;;  %v482_v14 = vsel %vm970_vm2, %v480_v4, 0.0  ;;  %v484_v15 = vsel %vm974_vm3, %v480_v4, 0.0  ;;  %vm745_vm2 = vmpackc.low %vm903_vm1, %vm744_vm0  ;;  %vm620_vm3 = vcmask 588800  }
 0x202   : > { %v833_v16 = vpack.i.bf16 %v482_v14, %v481_v9  ;;  %v838_v17 = vpack.i.bf16 %v484_v15, %v483_v10 }
 0x203   : > { %829 = vrot.lane.b32.xlu1 %v828_v13, %s893_s24 }
 0x204   : > { %834 = vrot.lane.b32.xlu0 %v833_v16, %s893_s24 }
 0x207   : > { %839 = vrot.lane.b32.xlu1 %v838_v17, %s893_s24 }
 0x275   : > { %v830_v5 = vpop.permute.xlu1 %829 }
 0x276   : > { %v832_v18 = vunpack.i.h.bf16 %v830_v5  ;;  %v831_v19 = vunpack.i.l.bf16 %v830_v5  ;;  %v835_v7 = vpop.permute.xlu0 %834 }
 0x277   : > { %v836_v21 = vunpack.i.l.bf16 %v835_v7  ;;  %v837_v26 = vunpack.i.h.bf16 %v835_v7 }
 0x278   : > { %v507_v20 = vsel %vm279_vm4, %v832_v18, 0.0  ;;  %v506_v11 = vsel %vm279_vm4, 0.0, %v831_v19  ;;  %v503_v12 = vsel %vm279_vm4, %v831_v19, %v832_v18 }
 0x279   : > { %521 = vrot.lane.b32.xlu1 %v506_v11, %s895_s26  ;;  %v840_v22 = vpop.permute.xlu1 %839  ;;  %555 = vrot.lane.b32.xlu0 %v506_v11, %s896_s27  ;;  %v843_v23 = vpack.i.bf16 %v507_v20, %v503_v12  ;;  %v495_v25 = vsel %vm279_vm4, 0.0, %v836_v21  ;;  %v496_v29 = vsel %vm279_vm4, %v837_v26, 0.0  ;;  %v491_v32 = vsel %vm279_vm4, %v836_v21, %v837_v26 }
 0x27a   : > { %v841_v24 = vunpack.i.l.bf16 %v840_v22  ;;  %v842_v27 = vunpack.i.h.bf16 %v840_v22  ;;  %v863_v34 = vpack.i.bf16 %v496_v29, %v491_v32 }
 0x27c   : > { %v517_v28 = vsel %vm279_vm4, 0.0, %v841_v24  ;;  %v518_v30 = vsel %vm279_vm4, %v842_v27, 0.0  ;;  %v514_v31 = vsel %vm279_vm4, %v841_v24, %v842_v27 }
 0x27d   : > { %844 = vrot.lane.b32.xlu0 %v843_v23, %s895_s26  ;;  %545 = vrot.lane.b32.xlu1 %v495_v25, %s898_s29  ;;  %v858_v33 = vpack.i.bf16 %v518_v30, %v514_v31  ;;  %v878_v35 = vpack.i.bf16 %v514_v31, %v517_v28 }
 0x281   : > { %533 = vrot.lane.b32.xlu0 %v517_v28, %s894_s25  ;;  %565 = vrot.lane.b32.xlu1 %v517_v28, %s900_s6 }
 0x285   : > { %849 = vrot.lane.b32.xlu0 %v843_v23, %s896_s27  ;;  %854 = vrot.lane.b32.xlu1 %v843_v23, %s899_s30 }
 0x289   : > { %859 = vrot.lane.b32.xlu0 %v858_v33, %s894_s25  ;;  %864 = vrot.lane.b32.xlu1 %v863_v34, %s898_s29 }
 0x28d   : > { %575 = vrot.lane.b32.xlu0 %v495_v25, %s897_s28  ;;  %869 = vrot.lane.b32.xlu1 %v858_v33, %s900_s6  ;;  %v615_v33 = vld [vmem:[%s1126_s3] sm:$0x3] }
 0x291   : > { %874 = vrot.lane.b32.xlu0 %v863_v34, %s897_s28  ;;  %585 = vrot.lane.b32.xlu1 %v506_v11, %s899_s30  ;;  %v616_v34 = vld [vmem:[%s1127_s4] sm:$0xff] }
 0x295   : > { %879 = vrot.lane.b32.xlu0 %v878_v35, %s902_s7  ;;  %599 = vrot.lane.b32.xlu1 %v518_v30, %s902_s7  ;;  %v618_v35 = vcombine.high %v616_v34, %v616_v34 }
 0x2eb   : > { %v522_v36 = vpop.permute.xlu1 %521  ;;  %v556_v37 = vpop.permute.xlu0 %555 }
 0x2ef   : > { %v845_v38 = vpop.permute.xlu0 %844  ;;  %v546_v39 = vpop.permute.xlu1 %545 }
 0x2f0   : > { %v847_v40 = vunpack.i.h.bf16 %v845_v38  ;;  %v846_v41 = vunpack.i.l.bf16 %v845_v38 }
 0x2f2   : > { %v528_v42 = vsel %vm317_vm5, %v846_v41, %v847_v40  ;;  %v527_v43 = vsel %vm317_vm5, %v522_v36, %v846_v41 }
 0x2f3   : > { %v534_v44 = vpop.permute.xlu0 %533  ;;  %v566_v45 = vpop.permute.xlu1 %565  ;;  %v606_v46 = vpack.c.bf16 %v528_v42, %v491_v32  ;;  %v746_v47 = vpack.c.bf16 %v527_v43, %v836_v21 }
 0x2f5   : > { %630 = vmatprep.subr.bf16.mxu1 %v606_v46 }
 0x2f6   : > { %747 = vmatpush1.bf16.msk.msra.mxu1 %vm745_vm2, %v746_v47 }
 0x2f7   : > { %v850_v48 = vpop.permute.xlu0 %849  ;;  %v855_v49 = vpop.permute.xlu1 %854 }
 0x2f8   : > { %v852_v56 = vunpack.i.h.bf16 %v850_v48  ;;  %v851_v57 = vunpack.i.l.bf16 %v850_v48  ;;  %v857_v4 = vunpack.i.h.bf16 %v855_v49  ;;  %v856_v9 = vunpack.i.l.bf16 %v855_v49 }
 0x2fa   : > { %v562_v10 = vsel %vm357_vm10, %v851_v57, %v852_v56  ;;  %v561_v14 = vsel %vm357_vm10, %v556_v37, %v851_v57  ;;  %v592_v12 = vsel %vm393_vm9, %v856_v9, %v857_v4 }
 0x2fb   : > { %v860_v50 = vpop.permute.xlu0 %859  ;;  %v865_v51 = vpop.permute.xlu1 %864 }
 0x2fc   : > { %v862_v52 = vunpack.i.h.bf16 %v860_v50  ;;  %v861_v53 = vunpack.i.l.bf16 %v860_v50  ;;  %v867_v54 = vunpack.i.h.bf16 %v865_v51  ;;  %v866_v55 = vunpack.i.l.bf16 %v865_v51 }
 0x2fe   : > { %v540_v58 = vsel %vm330_vm6, %v861_v53, %v862_v52  ;;  %v552_v59 = vsel %vm346_vm7, %v866_v55, %v867_v54  ;;  %v539_v60 = vsel %vm330_vm6, %v534_v44, %v861_v53  ;;  %v551_v61 = vsel %vm346_vm7, %v546_v39, %v866_v55 }
 0x2ff   : > { %v576_v62 = vpop.permute.xlu0 %575  ;;  %v870_v63 = vpop.permute.xlu1 %869  ;;  %v608_v0 = vpack.c.bf16 %v552_v59, %v540_v58  ;;  %v607_v1 = vpack.c.bf16 %v551_v61, %v539_v60 }
 0x300   : > { %v872_v2 = vunpack.i.h.bf16 %v870_v63  ;;  %v871_v3 = vunpack.i.l.bf16 %v870_v63 }
 0x301   : > { %632 = vmatprep.subr.bf16.mxu1 %v608_v0 }
 0x302   : > { %633 = vmatpush1.bf16.msra.mxu1 %v607_v1  ;;  %v572_v13 = vsel %vm371_vm11, %v871_v3, %v872_v2  ;;  %v571_v15 = vsel %vm371_vm11, %v566_v45, %v871_v3 }
 0x303   : > { %v875_v16 = vpop.permute.xlu0 %874  ;;  %v586_v17 = vpop.permute.xlu1 %585  ;;  %v610_v5 = vpack.c.bf16 %v572_v13, %v562_v10  ;;  %v609_v18 = vpack.c.bf16 %v571_v15, %v561_v14 }
 0x304   : > { %v877_v19 = vunpack.i.h.bf16 %v875_v16  ;;  %v876_v7 = vunpack.i.l.bf16 %v875_v16  ;;  %v591_v21 = vsel %vm393_vm9, %v586_v17, %v856_v9 }
 0x305   : > { %634 = vmatprep.subr.bf16.mxu1 %v610_v5 }
 0x306   : > { %v581_v20 = vsel %vm382_vm12, %v576_v62, %v876_v7  ;;  %635 = vmatpush1.bf16.msra.mxu1 %v609_v18  ;;  %v582_v11 = vsel %vm382_vm12, %v876_v7, %v877_v19 }
 0x307   : > { %v611_v22 = vpack.c.bf16 %v591_v21, %v581_v20  ;;  %v880_v23 = vpop.permute.xlu0 %879  ;;  %v612_v24 = vpack.c.bf16 %v592_v12, %v582_v11  ;;  %v600_v27 = vpop.permute.xlu1 %599 }
 0x308   : > { %v882_v25 = vunpack.i.h.bf16 %v880_v23  ;;  %v881_v26 = vunpack.i.l.bf16 %v880_v23 }
 0x309   : > { %636 = vmatprep.subr.bf16.mxu1 %v612_v24 }
 0x30a   : > { %v602_v28 = vsel %vm404_vm13, %v882_v25, %v600_v27  ;;  %637 = vmatpush1.bf16.msra.mxu1 %v611_v22  ;;  %v601_v29 = vsel %vm404_vm13, %v881_v26, %v882_v25 }
 0x30b   : > { %v614_v30 = vpack.c.bf16 %v602_v28, %v602_v28  ;;  %v613_v31 = vpack.c.bf16 %v601_v29, %v601_v29 }
 0x30d   : > { %748 = vmatprep.subr.msk.bf16.mxu1 %vm409_vm8, %v614_v30  ;;  %v625_v32 = vsel %vm409_vm8, %v613_v31, 0 }
 0x30e   : > { %639 = vmatpush1.bf16.msra.mxu1 %v625_v32 }
 0x311   : > { %749 = vmatmul.mubr.msk.bf16.vlgmr.msra.gmra.mrb[0].mxu1 %vm620_vm3, %v615_v33 }
 0x3e4   : > { %v664_v36 = vpop.f32.mrb[0].mxu1 }
 0x3e5   : > { %v665_v37 = vadd.f32 %v664_v36, %v616_v34  ;;  %v666_v38 = vpop.f32.mrb[1].mxu1 }
 0x3e6   : > { %v667_v39 = vadd.f32 %v666_v38, %v618_v35  ;;  %v668_v40 = vpop.f32.mrb[2].mxu1 }
 0x3e7   : > { %v671_v41 = vadd.f32 %v665_v37, %v954_v6  ;;  %v669_v42 = vpop.f32.mrb[3].mxu1 }
 0x3e8   : > { %v672_v43 = vadd.f32 %v667_v39, %v962_v8 }
 0x3ea   : > { %v675_v44 = vcombine.low %v671_v41, %v672_v43 }
 0x3ec   : > { %677 = vst [vmem:[%s224_s23] sm:$0xff] %v675_v44 }
 0x3ed PF: > { %s15_s18 = sadd.s32 1, %s891_s18  }
 0x3ee   : > { %p12_p4 = scmp.ge.s32.totalorder %s15_s18, 4  }
 0x3f0   :  { %14 = sbr.rel (!%p12_p4) target bundleno = 1 (0x1), region = 70 }

</bundles_post_ra>
